<compile_context>
chip_gen: v6e
topology: v6e:2x2x1
jax: 0.10.0
libtpu: 0.0.40
codegen_flags: <defaults>
</compile_context>

<pallas_src>
import math

import jax
import jax.numpy as jnp
from jax.experimental import pallas as pl
from jax.experimental.pallas import tpu as pltpu


def _round8(n):
    return ((n + 7) // 8) * 8


def encoder_kernel(idx_ref, tbl_ref, whe_ref, who_ref, bh_ref, scale_ref,
                   out_ref):
    # idx_ref:   [P, 2]   int32; col0 = even-slot token, col1 = odd-slot token
    # tbl_ref:   [V, Z]   fused table = emb @ w1 + b1 (Linear1 folded in)
    # whe_ref:   [Z, 4Z]  = [wt | 0 | wp | 0 ]  (multiplies the even-slot h)
    # who_ref:   [Z, 4Z]  = [ 0 | wt | 0 | wp]  (multiplies the odd-slot h)
    # bh_ref:    [1, 4Z]  = [bt, bt, bp, bp]
    # scale_ref: [1, 4Z]  = [pi*Z, pi*Z, 2pi*Z, 2pi*Z]
    # out_ref:   [P, 4Z]  row r = [theta_{2r}, theta_{2r+1}, phi_{2r}, phi_{2r+1}]
    P = idx_ref.shape[0]
    V = tbl_ref.shape[0]

    # Per-slot one-hot gather directly into the pre-activation h (exact in f32:
    # each row has a single 1.0, so onehot @ table1 == table1[idx] == e@w1+b1).
    # Out-of-range indices silently yield a zero row (unlike nn.Embedding which
    # would error).
    # TODO(synk): for large vocab (V >~ 4-16K) the [P, V] one-hot temp grows as
    # TILE_P*V*4 B; switch to a scalar-prefetched / manual-DMA row gather before
    # it approaches ~16-32 MiB (v7x has only 64 MiB physical VMEM).
    iota = jax.lax.broadcasted_iota(jnp.int32, (P, V), 1)
    oh_even = (iota == idx_ref[:, 0:1]).astype(jnp.float32)
    oh_odd = (iota == idx_ref[:, 1:2]).astype(jnp.float32)
    h_even = jnp.dot(oh_even, tbl_ref[...], preferred_element_type=jnp.float32)
    h_odd = jnp.dot(oh_odd, tbl_ref[...], preferred_element_type=jnp.float32)

    # LeakyReLU(0.01) -- maximum form: 2 VALU ops per vreg, no compare+select.
    h_even = jnp.maximum(h_even, jnp.float32(0.01) * h_even)
    h_odd = jnp.maximum(h_odd, jnp.float32(0.01) * h_odd)

    # Fused theta/phi heads for both pair slots.  The zero-block-padded weights
    # assemble the lane-dense [P, 128] result purely through MXU adds -- no
    # in-kernel concat / sub-128-lane stores.
    z = (jnp.dot(h_even, whe_ref[...], preferred_element_type=jnp.float32)
         + jnp.dot(h_odd, who_ref[...], preferred_element_type=jnp.float32)
         + bh_ref[...])

    # sigmoid(z) * scale: exp on the EUP slot, exact reciprocal (keeps 1e-4
    # parity with the reference; approx=True would be ~1e-3 off in the tails).
    s = pl.reciprocal(jnp.float32(1.0) + jnp.exp(-z))
    out_ref[...] = (s * scale_ref[...]).astype(out_ref.dtype)


def prepare_params(params):
    """Build the packed / fused parameters ONCE (not per forward call)."""
    emb, w1, b1 = params["emb"], params["w1"], params["b1"]
    wt, bt = params["wt"], params["bt"]
    wp, bp = params["wp"], params["bp"]
    V, Z = emb.shape

    # Linear1 folded into the gather table (exact up to f32 rounding order).
    table1 = jnp.dot(emb, w1, precision=jax.lax.Precision.HIGHEST) + b1  # [V, Z]

    zZ = jnp.zeros((Z, Z), jnp.float32)
    whe = jnp.concatenate([wt, zZ, wp, zZ], axis=1)          # [Z, 4Z]
    who = jnp.concatenate([zZ, wt, zZ, wp], axis=1)          # [Z, 4Z]
    bh = jnp.concatenate([bt, bt, bp, bp]).reshape(1, 4 * Z)
    scale = jnp.concatenate([
        jnp.full((2 * Z,), math.pi, jnp.float32),
        jnp.full((2 * Z,), 2.0 * math.pi, jnp.float32),
    ]).reshape(1, 4 * Z)

    return {"table1": table1, "whe": whe, "who": who, "bh": bh, "scale": scale}


def encoder_forward(x, packed, tile_pairs=2048):
    """x: integer array of arbitrary shape (token indices in [0, 2**data_dim)).
    Returns (theta, phi), each of shape x.shape + (z_dim,)."""
    table1 = packed["table1"]
    V, Z = table1.shape

    orig_shape = x.shape
    flat = x.reshape(-1).astype(jnp.int32)
    T = flat.shape[0]

    # --- pair packing: two tokens per row so the output block is [P, 4Z=128] ---
    n_pairs = max((T + 1) // 2, 1)
    # Tile is a multiple of 8 sublanes, capped so there are >= 2 tiles whenever
    # there is enough work (keeps both v7x TensorCores busy), and at most
    # `tile_pairs` to amortize the ~0.35 us/step grid overhead.
    TILE_P = max(8, min(int(tile_pairs), _round8((n_pairs + 1) // 2)))
    n_tiles = (n_pairs + TILE_P - 1) // TILE_P
    pairs_padded = n_tiles * TILE_P
    flat = jnp.pad(flat, (0, 2 * pairs_padded - T))          # pad with token 0
    idx_pair = flat.reshape(pairs_padded, 2)

    out2 = pl.pallas_call(
        encoder_kernel,
        out_shape=jax.ShapeDtypeStruct((pairs_padded, 4 * Z), jnp.float32),
        grid=(n_tiles,),
        in_specs=[
            pl.BlockSpec((TILE_P, 2), lambda i: (i, 0)),      # idx tile (streamed)
            pl.BlockSpec((V, Z), lambda i: (0, 0)),           # resident fused table
            pl.BlockSpec((Z, 4 * Z), lambda i: (0, 0)),       # resident even-head W
            pl.BlockSpec((Z, 4 * Z), lambda i: (0, 0)),       # resident odd-head W
            pl.BlockSpec((1, 4 * Z), lambda i: (0, 0)),       # resident fused bias
            pl.BlockSpec((1, 4 * Z), lambda i: (0, 0)),       # resident scale row
        ],
        out_specs=pl.BlockSpec((TILE_P, 4 * Z), lambda i: (i, 0)),
        compiler_params=pltpu.CompilerParams(
            dimension_semantics=("parallel",),
            vmem_limit_bytes=32 * 1024 * 1024,
        ),
    )(idx_pair, table1, packed["whe"], packed["who"], packed["bh"],
      packed["scale"])

    # 64-lane-aligned split + contiguous reshape (pairs -> tokens), drop padding.
    theta = out2[:, :2 * Z].reshape(2 * pairs_padded, Z)[:T]
    phi = out2[:, 2 * Z:].reshape(2 * pairs_padded, Z)[:T]
    return theta.reshape(orig_shape + (Z,)), phi.reshape(orig_shape + (Z,))


def init_params(key, z_dim, data_dim):
    """Deterministic synthetic init matching the PyTorch module's shapes.
    nn.Linear stores weight [out, in]; we pre-transpose to [in, out]."""
    vocab = 2 ** data_dim
    ks = jax.random.split(key, 7)
    bound = 1.0 / math.sqrt(z_dim)
    u = lambda k, s: jax.random.uniform(k, s, jnp.float32, -bound, bound)
    return {
        "emb": jax.random.normal(ks[0], (vocab, z_dim), jnp.float32),
        "w1": u(ks[1], (z_dim, z_dim)), "b1": u(ks[2], (z_dim,)),
        "wt": u(ks[3], (z_dim, z_dim)), "bt": u(ks[4], (z_dim,)),
        "wp": u(ks[5], (z_dim, z_dim)), "bp": u(ks[6], (z_dim,)),
        # TODO(synk): log_kappa_linear params exist in __init__ but are unused in forward.
    }


if __name__ == "__main__":
    z_dim = 32
    data_dim = 8            # vocab = 256

    key = jax.random.PRNGKey(0)
    pkey, k1, k2 = jax.random.split(key, 3)
    params = init_params(pkey, z_dim, data_dim)
    packed = prepare_params(params)   # built once, reused across forward calls

    def reference(x):
        e = params["emb"][x]
        h = e @ params["w1"] + params["b1"]
        h = jnp.where(h > 0, h, 0.01 * h)
        theta = jax.nn.sigmoid(h @ params["wt"] + params["bt"]) * math.pi
        phi = jax.nn.sigmoid(h @ params["wp"] + params["bp"]) * 2.0 * math.pi
        return theta, phi

    # Small shape (batch=2, seq=8): single-tile path.
    x_small = jax.random.randint(k1, (2, 8), 0, 2 ** data_dim, dtype=jnp.int32)
    theta, phi = encoder_forward(x_small, packed)
    jax.block_until_ready((theta, phi))
    t_ref, p_ref = reference(x_small)
    assert theta.shape == (2, 8, z_dim) and phi.shape == (2, 8, z_dim)
    assert jnp.allclose(theta, t_ref, atol=1e-4)
    assert jnp.allclose(phi, p_ref, atol=1e-4)

    # Larger shape: exercises the multi-tile grid (2 tiles) + pair packing.
    x_big = jax.random.randint(k2, (4, 600), 0, 2 ** data_dim, dtype=jnp.int32)
    theta_b, phi_b = encoder_forward(x_big, packed)
    jax.block_until_ready((theta_b, phi_b))
    t_refb, p_refb = reference(x_big)
    assert theta_b.shape == (4, 600, z_dim) and phi_b.shape == (4, 600, z_dim)
    assert jnp.allclose(theta_b, t_refb, atol=1e-4)
    assert jnp.allclose(phi_b, p_refb, atol=1e-4)

    print("KERNEL_OK")
</pallas_src>

<mosaic_0001>
module attributes {stable_mosaic.version = 11 : i64} {
  func.func @encoder_kernel(%arg0: i32, %arg1: memref<8x2xi32, #tpu.memory_space<vmem>>, %arg2: memref<256x32xf32, #tpu.memory_space<vmem>>, %arg3: memref<32x128xf32, #tpu.memory_space<vmem>>, %arg4: memref<32x128xf32, #tpu.memory_space<vmem>>, %arg5: memref<1x128xf32, #tpu.memory_space<vmem>>, %arg6: memref<1x128xf32, #tpu.memory_space<vmem>>, %arg7: memref<8x128xf32, #tpu.memory_space<vmem>>) attributes {dimension_semantics = [#tpu.dimension_semantics<parallel>], iteration_bounds = array<i64: 1>, scalar_prefetch = 0 : i64, scratch_operands = 0 : i64, tpu.core_type = #tpu.core_type<tc>, window_params = [{transform_indices = @transform_0, window_bounds = array<i64: 8, 2>}, {pipeline_mode = #tpu.pipeline_mode<synchronous>, transform_indices = @transform_1, window_bounds = array<i64: 256, 32>}, {pipeline_mode = #tpu.pipeline_mode<synchronous>, transform_indices = @transform_2, window_bounds = array<i64: 32, 128>}, {pipeline_mode = #tpu.pipeline_mode<synchronous>, transform_indices = @transform_3, window_bounds = array<i64: 32, 128>}, {pipeline_mode = #tpu.pipeline_mode<synchronous>, transform_indices = @transform_4, window_bounds = array<i64: 1, 128>}, {pipeline_mode = #tpu.pipeline_mode<synchronous>, transform_indices = @transform_5, window_bounds = array<i64: 1, 128>}, {transform_indices = @transform_6, window_bounds = array<i64: 8, 128>}]} {
    %0 = tpu.iota {dimensions = array<i32: 1>} : vector<8x256xi32>
    %c0 = arith.constant 0 : index
    %c0_0 = arith.constant 0 : index
    %1 = vector.load %arg1[%c0, %c0_0] : memref<8x2xi32, #tpu.memory_space<vmem>>, vector<8x1xi32>
    %2 = vector.broadcast %1 : vector<8x1xi32> to vector<8x256xi32>
    %3 = arith.cmpi eq, %0, %2 : vector<8x256xi32>
    %4 = arith.extui %3 : vector<8x256xi1> to vector<8x256xi32>
    %5 = arith.sitofp %4 : vector<8x256xi32> to vector<8x256xf32>
    %c0_1 = arith.constant 0 : index
    %c1 = arith.constant 1 : index
    %6 = vector.load %arg1[%c0_1, %c1] : memref<8x2xi32, #tpu.memory_space<vmem>>, vector<8x1xi32>
    %7 = vector.broadcast %6 : vector<8x1xi32> to vector<8x256xi32>
    %8 = arith.cmpi eq, %0, %7 : vector<8x256xi32>
    %9 = arith.extui %8 : vector<8x256xi1> to vector<8x256xi32>
    %10 = arith.sitofp %9 : vector<8x256xi32> to vector<8x256xf32>
    %c0_2 = arith.constant 0 : index
    %c0_3 = arith.constant 0 : index
    %11 = vector.load %arg2[%c0_2, %c0_3] : memref<256x32xf32, #tpu.memory_space<vmem>>, vector<256x32xf32>
    %cst = arith.constant dense<0.000000e+00> : vector<8x32xf32>
    %12 = tpu.matmul %5, %11, %cst {dimension_numbers = #tpu.dot_dimension_numbers<[1], [0], [0], [1], [0, 0, 1, 1], [], []>} : vector<8x256xf32>, vector<256x32xf32>, vector<8x32xf32> -> vector<8x32xf32>
    %c0_4 = arith.constant 0 : index
    %c0_5 = arith.constant 0 : index
    %13 = vector.load %arg2[%c0_4, %c0_5] : memref<256x32xf32, #tpu.memory_space<vmem>>, vector<256x32xf32>
    %cst_6 = arith.constant dense<0.000000e+00> : vector<8x32xf32>
    %14 = tpu.matmul %10, %13, %cst_6 {dimension_numbers = #tpu.dot_dimension_numbers<[1], [0], [0], [1], [0, 0, 1, 1], [], []>} : vector<8x256xf32>, vector<256x32xf32>, vector<8x32xf32> -> vector<8x32xf32>
    %cst_7 = arith.constant 0.00999999977 : f32
    %15 = vector.broadcast %cst_7 : f32 to vector<8x32xf32>
    %16 = arith.mulf %15, %12 : vector<8x32xf32>
    %17 = arith.maximumf %12, %16 : vector<8x32xf32>
    %cst_8 = arith.constant 0.00999999977 : f32
    %18 = vector.broadcast %cst_8 : f32 to vector<8x32xf32>
    %19 = arith.mulf %18, %14 : vector<8x32xf32>
    %20 = arith.maximumf %14, %19 : vector<8x32xf32>
    %c0_9 = arith.constant 0 : index
    %c0_10 = arith.constant 0 : index
    %21 = vector.load %arg3[%c0_9, %c0_10] : memref<32x128xf32, #tpu.memory_space<vmem>>, vector<32x128xf32>
    %cst_11 = arith.constant dense<0.000000e+00> : vector<8x128xf32>
    %22 = tpu.matmul %17, %21, %cst_11 {dimension_numbers = #tpu.dot_dimension_numbers<[1], [0], [0], [1], [0, 0, 1, 1], [], []>} : vector<8x32xf32>, vector<32x128xf32>, vector<8x128xf32> -> vector<8x128xf32>
    %c0_12 = arith.constant 0 : index
    %c0_13 = arith.constant 0 : index
    %23 = vector.load %arg4[%c0_12, %c0_13] : memref<32x128xf32, #tpu.memory_space<vmem>>, vector<32x128xf32>
    %cst_14 = arith.constant dense<0.000000e+00> : vector<8x128xf32>
    %24 = tpu.matmul %20, %23, %cst_14 {dimension_numbers = #tpu.dot_dimension_numbers<[1], [0], [0], [1], [0, 0, 1, 1], [], []>} : vector<8x32xf32>, vector<32x128xf32>, vector<8x128xf32> -> vector<8x128xf32>
    %25 = arith.addf %22, %24 : vector<8x128xf32>
    %c0_15 = arith.constant 0 : index
    %c0_16 = arith.constant 0 : index
    %26 = vector.load %arg5[%c0_15, %c0_16] : memref<1x128xf32, #tpu.memory_space<vmem>>, vector<1x128xf32>
    %27 = vector.broadcast %26 : vector<1x128xf32> to vector<8x128xf32>
    %28 = arith.addf %25, %27 : vector<8x128xf32>
    %cst_17 = arith.constant 0.000000e+00 : f32
    %29 = vector.broadcast %cst_17 : f32 to vector<8x128xf32>
    %30 = arith.subf %29, %28 : vector<8x128xf32>
    %31 = math.exp %30 : vector<8x128xf32>
    %cst_18 = arith.constant 1.000000e+00 : f32
    %32 = vector.broadcast %cst_18 : f32 to vector<8x128xf32>
    %33 = arith.addf %32, %31 : vector<8x128xf32>
    %34 = tpu.reciprocal %33 : vector<8x128xf32> -> vector<8x128xf32>
    %c0_19 = arith.constant 0 : index
    %c0_20 = arith.constant 0 : index
    %35 = vector.load %arg6[%c0_19, %c0_20] : memref<1x128xf32, #tpu.memory_space<vmem>>, vector<1x128xf32>
    %36 = vector.broadcast %35 : vector<1x128xf32> to vector<8x128xf32>
    %37 = arith.mulf %34, %36 : vector<8x128xf32>
    %c0_21 = arith.constant 0 : index
    %c0_22 = arith.constant 0 : index
    %38 = vector.load %arg7[%c0_21, %c0_22] : memref<8x128xf32, #tpu.memory_space<vmem>>, vector<8x128xf32>
    tpu.vector_store %arg7[%c0_21, %c0_22], %37 {strides = array<i32>} : memref<8x128xf32, #tpu.memory_space<vmem>>, vector<8x128xf32>,
    return
  }
  func.func @transform_0(%arg0: i32) -> (i32, i32) {
    %c0_i32 = arith.constant 0 : i32
    %c0_i32_0 = arith.constant 0 : i32
    return %arg0, %c0_i32 : i32, i32
  }
  func.func @transform_1(%arg0: i32) -> (i32, i32) {
    %c0_i32 = arith.constant 0 : i32
    %c0_i32_0 = arith.constant 0 : i32
    %c0_i32_1 = arith.constant 0 : i32
    return %c0_i32, %c0_i32_0 : i32, i32
  }
  func.func @transform_2(%arg0: i32) -> (i32, i32) {
    %c0_i32 = arith.constant 0 : i32
    %c0_i32_0 = arith.constant 0 : i32
    %c0_i32_1 = arith.constant 0 : i32
    return %c0_i32, %c0_i32_0 : i32, i32
  }
  func.func @transform_3(%arg0: i32) -> (i32, i32) {
    %c0_i32 = arith.constant 0 : i32
    %c0_i32_0 = arith.constant 0 : i32
    %c0_i32_1 = arith.constant 0 : i32
    return %c0_i32, %c0_i32_0 : i32, i32
  }
  func.func @transform_4(%arg0: i32) -> (i32, i32) {
    %c0_i32 = arith.constant 0 : i32
    %c0_i32_0 = arith.constant 0 : i32
    %c0_i32_1 = arith.constant 0 : i32
    return %c0_i32, %c0_i32_0 : i32, i32
  }
  func.func @transform_5(%arg0: i32) -> (i32, i32) {
    %c0_i32 = arith.constant 0 : i32
    %c0_i32_0 = arith.constant 0 : i32
    %c0_i32_1 = arith.constant 0 : i32
    return %c0_i32, %c0_i32_0 : i32, i32
  }
  func.func @transform_6(%arg0: i32) -> (i32, i32) {
    %c0_i32 = arith.constant 0 : i32
    %c0_i32_0 = arith.constant 0 : i32
    return %arg0, %c0_i32 : i32, i32
  }
}

</mosaic_0001>

<bundles_post_ra>
// kernel: tpu_custom_call.1
= control target key start
LH: loop header
LB: loop body
LE: loop exit
PB: predicated region body
PF: predicated region fallthrough
CT: control target
= control target key end

     0   :  { %v561_v3 = vmov 0   ;;  %v562_v10 = vmov 1   ;;  %s734_s0 = inlined_call_operand.vmem [shape: s32[8,2], index: 0, kind: input, shape index: {}]   ;;  %s735_s1 = inlined_call_operand.vmem [shape: f32[256,32], index: 1, kind: input, shape index: {}]   ;;  %s736_s2 = inlined_call_operand.vmem [shape: f32[32,128], index: 2, kind: input, shape index: {}]   ;;  %s737_s3 = inlined_call_operand.vmem [shape: f32[32,128], index: 3, kind: input, shape index: {}]   ;;  %s738_s4 = inlined_call_operand.vmem [shape: f32[1,128], index: 4, kind: input, shape index: {}]   ;;  %s739_s5 = inlined_call_operand.vmem [shape: f32[1,128], index: 5, kind: input, shape index: {}]   ;;  %s740_s6 = inlined_call_operand.hbm [shape: f32[8,128], index: 6, kind: output, shape index: {}]  }
   0x1   :  { %v27_v0 = vld [vmem:[%s734_s0] sm:$0xff]  ;;  %v77_v1 = vld [vmem:[%s735_s1 + $0xf8] sm:$0xff]  ;;  %533 = vset.pattern.permute.xlu0 %v561_v3  ;;  %v76_v4 = vld [vmem:[%s735_s1 + $0xf0] sm:$0xff] }
   0x2   :  { %v61_v2 = vld [vmem:[%s735_s1 + $0x78] sm:$0xff]  ;;  %425 = vmatprep.subr.mxu0 %v77_v1  ;;  %v60_v5 = vld [vmem:[%s735_s1 + $0x70] sm:$0xff]  ;;  %29 = vperm.xlu0 %533, %v27_v0   ;;  %v75_v6 = vld [vmem:[%s735_s1 + $0xe8] sm:$0xff] }
   0x3   :  { %426 = vmatpush3.msra.mxu0 %v61_v2  ;;  %v59_v7 = vld [vmem:[%s735_s1 + $0x68] sm:$0xff]  ;;  %460 = vmatprep.subr.mxu1 %v77_v1  ;;  %v74_v8 = vld [vmem:[%s735_s1 + $0xe0] sm:$0xff]  ;;  %v73_v11 = vld [vmem:[%s735_s1 + $0xd8] sm:$0xff] }
   0x4   :  { %427 = vmatprep.subr.mxu0 %v76_v4  ;;  %461 = vmatpush3.msra.mxu1 %v61_v2  ;;  %v58_v9 = vld [vmem:[%s735_s1 + $0x60] sm:$0xff]  ;;  %v57_v12 = vld [vmem:[%s735_s1 + $0x58] sm:$0xff]  ;;  %v72_v13 = vld [vmem:[%s735_s1 + $0xd0] sm:$0xff] }
   0x5   :  { %428 = vmatpush3.msra.mxu0 %v60_v5  ;;  %462 = vmatprep.subr.mxu1 %v76_v4  ;;  %v56_v14 = vld [vmem:[%s735_s1 + $0x50] sm:$0xff]  ;;  %v71_v15 = vld [vmem:[%s735_s1 + $0xc8] sm:$0xff] }
   0x6   :  { %429 = vmatprep.subr.mxu0 %v75_v6  ;;  %534 = vset.pattern.permute.xlu0 %v562_v10  ;;  %v55_v16 = vld [vmem:[%s735_s1 + $0x48] sm:$0xff] }
   0x7   :  { %430 = vmatpush3.msra.mxu0 %v59_v7  ;;  %38 = vperm.xlu0 %534, %v27_v0  }
   0x8   :  { %431 = vmatprep.subr.mxu0 %v74_v8  ;;  %463 = vmatpush3.msra.mxu1 %v60_v5 }
   0x9   :  { %432 = vmatpush3.msra.mxu0 %v58_v9  ;;  %464 = vmatprep.subr.mxu1 %v75_v6 }
   0xa   :  { %433 = vmatprep.subr.mxu0 %v73_v11  ;;  %465 = vmatpush3.msra.mxu1 %v59_v7 }
   0xb   :  { %434 = vmatpush3.msra.mxu0 %v57_v12  ;;  %466 = vmatprep.subr.mxu1 %v74_v8 }
   0xc   :  { %435 = vmatprep.subr.mxu0 %v72_v13 }
   0xd   :  { %11 = vsyncpa [#allocation3], 0  ;;  %436 = vmatpush3.msra.mxu0 %v56_v14  ;;  %467 = vmatpush3.msra.mxu1 %v58_v9  ;;  %v70_v17 = vld [vmem:[%s735_s1 + $0xc0] sm:$0xff]  ;;  %v69_v19 = vld [vmem:[%s735_s1 + $0xb8] sm:$0xff]  ;;  %v24_v35 = vlaneseq  ;;  %v563_v39 = vmov 1.0   ;;  %v564_v41 = vmov 0.0  }
   0xe   :  { %437 = vmatprep.subr.mxu0 %v71_v15  ;;  %468 = vmatprep.subr.mxu1 %v73_v11  ;;  %v54_v18 = vld [vmem:[%s735_s1 + $0x40] sm:$0xff]  ;;  %v53_v20 = vld [vmem:[%s735_s1 + $0x38] sm:$0xff]  ;;  %v68_v21 = vld [vmem:[%s735_s1 + $0xb0] sm:$0xff]  ;;  %vm565_vm4 = vmmov 0   ;;  %vm230_vm5 = vcmask 261120   ;;  %s566_s29 = smov [#allocation2]  }
   0xf   :  { %438 = vmatpush3.msra.mxu0 %v55_v16  ;;  %469 = vmatpush3.msra.mxu1 %v57_v12  ;;  %v52_v22 = vld [vmem:[%s735_s1 + $0x30] sm:$0xff]  ;;  %v67_v23 = vld [vmem:[%s735_s1 + $0xa8] sm:$0xff]  ;;  %v66_v25 = vld [vmem:[%s735_s1 + $0xa0] sm:$0xff]  ;;  %v25_v36 = vand.u32 127, %v24_v35  ;;  %s405_s30 = sshll.u32 %s566_s29, 4  ;;  %s406_s30 = int_to_ptr.vmem [resolvable:$true] %s405_s30 }
  0x10   :  { %439 = vmatprep.subr.mxu0 %v70_v17  ;;  %470 = vmatprep.subr.mxu1 %v72_v13  ;;  %v51_v24 = vld [vmem:[%s735_s1 + $0x28] sm:$0xff]  ;;  %v50_v26 = vld [vmem:[%s735_s1 + $0x20] sm:$0xff]  ;;  %v65_v27 = vld [vmem:[%s735_s1 + $0x98] sm:$0xff]  ;;  %p544_p1 = scmp.lt.s32.totalorder %s406_s30, %s406_s30 }
  0x11   :  { %440 = vmatpush3.msra.mxu0 %v54_v18  ;;  %471 = vmatpush3.msra.mxu1 %v56_v14  ;;  %v49_v28 = vld [vmem:[%s735_s1 + $0x18] sm:$0xff]  ;;  %v64_v29 = vld [vmem:[%s735_s1 + $0x90] sm:$0xff]  ;;  %v63_v31 = vld [vmem:[%s735_s1 + $0x88] sm:$0xff]  ;;  %v26_v37 = vadd.s32 128, %v25_v36 }
  0x12   :  { %441 = vmatprep.subr.mxu0 %v69_v19  ;;  %472 = vmatprep.subr.mxu1 %v71_v15  ;;  %v48_v30 = vld [vmem:[%s735_s1 + $0x10] sm:$0xff]  ;;  %v47_v32 = vld [vmem:[%s735_s1 + $0x8] sm:$0xff]  ;;  %v62_v33 = vld [vmem:[%s735_s1 + $0x80] sm:$0xff] }
  0x13   :  { %442 = vmatpush3.msra.mxu0 %v53_v20  ;;  %473 = vmatpush3.msra.mxu1 %v55_v16  ;;  %v46_v34 = vld [vmem:[%s735_s1] sm:$0xff]  ;;  %v225_v42 = vld [vmem:[%s736_s2 + $0x18] sm:$0xff]  ;;  %v224_v43 = vld [vmem:[%s736_s2 + $0x10] sm:$0xff] }
  0x14   :  { %443 = vmatprep.subr.mxu0 %v68_v21  ;;  %474 = vmatprep.subr.mxu1 %v70_v17  ;;  %v223_v44 = vld [vmem:[%s736_s2 + $0x8] sm:$0xff]  ;;  %v229_v45 = vld [vmem:[%s737_s3 + $0x18] sm:$0xff]  ;;  %v222_v46 = vld [vmem:[%s736_s2] sm:$0xff] }
  0x15   :  { %444 = vmatpush3.msra.mxu0 %v52_v22  ;;  %475 = vmatpush3.msra.mxu1 %v54_v18  ;;  %v228_v47 = vld [vmem:[%s737_s3 + $0x10] sm:$0xff]  ;;  %v227_v48 = vld [vmem:[%s737_s3 + $0x8] sm:$0xff]  ;;  %v226_v49 = vld [vmem:[%s737_s3] sm:$0xff] }
  0x16   :  { %445 = vmatprep.subr.mxu0 %v67_v23  ;;  %476 = vmatprep.subr.mxu1 %v69_v19  ;;  %v423_v63 = vld [vmem:[%s738_s4] ss:$0 sm:$0xff]  ;;  %s539_s4 = scalar_lea.vmem %s406_s30, 128 }
  0x17   :  { %446 = vmatpush3.msra.mxu0 %v51_v24  ;;  %477 = vmatpush3.msra.mxu1 %v53_v20  ;;  %v424_v7 = vld [vmem:[%s739_s5] ss:$0 sm:$0xff]  ;;  %p540_p0 = scmp.ne.s32.totalorder %s406_s30, %s539_s4  ;;  %p545_p2 = scmp.lt.s32.totalorder %s539_s4, %s539_s4 }
  0x18   :  { %447 = vmatprep.subr.mxu0 %v66_v25  ;;  %478 = vmatprep.subr.mxu1 %v68_v21 }
  0x19   :  { %448 = vmatpush3.msra.mxu0 %v50_v26  ;;  %479 = vmatpush3.msra.mxu1 %v52_v22  ;;  %p546_p3 = por %p545_p2, %p544_p1 }
  0x1a   :  { %449 = vmatprep.subr.mxu0 %v65_v27  ;;  %480 = vmatprep.subr.mxu1 %v67_v23 }
  0x1b   :  { %450 = vmatpush3.msra.mxu0 %v49_v28  ;;  %481 = vmatpush3.msra.mxu1 %v51_v24  ;;  %p547_p4 = pnand %p546_p3, %p540_p0 }
  0x1c   :  { %451 = vmatprep.subr.mxu0 %v64_v29  ;;  %482 = vmatprep.subr.mxu1 %v66_v25 }
  0x1d   :  { %452 = vmatpush3.msra.mxu0 %v48_v30  ;;  %483 = vmatpush3.msra.mxu1 %v50_v26 }
  0x1e   :  { %453 = vmatprep.subr.mxu0 %v63_v31  ;;  %484 = vmatprep.subr.mxu1 %v65_v27 }
  0x1f   :  { %454 = vmatpush3.msra.mxu0 %v47_v32  ;;  %485 = vmatpush3.msra.mxu1 %v49_v28 }
  0x20   :  { %455 = vmatprep.subr.mxu0 %v62_v33  ;;  %486 = vmatprep.subr.mxu1 %v64_v29 }
  0x21   :  { %456 = vmatpush3.msra.mxu0 %v46_v34  ;;  %487 = vmatpush3.msra.mxu1 %v48_v30 }
  0x22   :  { %488 = vmatprep.subr.mxu1 %v63_v31  ;;  %505 = vmatprep.subr.mxu0 %v564_v41 }
  0x23   :  { %489 = vmatpush3.msra.mxu1 %v47_v32 }
  0x24   :  { %490 = vmatprep.subr.mxu1 %v62_v33 }
  0x25   :  { %491 = vmatpush3.msra.mxu1 %v46_v34 }
  0x26   :  { %516 = vmatprep.subr.mxu1 %v564_v41 }
  0x7d   :  { %v30_v38 = vpop.permute.xlu0 %29 }
  0x7e   :  { %vm31_vm0 = vcmp.eq.s32.totalorder %v25_v36, %v30_v38  ;;  %vm32_vm1 = vcmp.eq.s32.totalorder %v26_v37, %v30_v38 }
  0x7f   :  { %417 = vmatprep.mubr.msk.f32.mxu0 %vm32_vm1, %v563_v39 }
  0x80   :  { %418 = vmatmul.mubr.msk.f32.vlgmr.msra.gmra.mxu0 %vm31_vm0, %v563_v39 }
  0x81   :  { %506 = vmatpush3.msra.mxu0 %v229_v45  ;;  %513 = vmatprep.mubr.msk.f32.mxu0 %vm565_vm4, %v564_v41 }
  0x82   :  { %v39_v40 = vpop.permute.xlu0 %38  ;;  %507 = vmatprep.subr.mxu0 %v564_v41 }
  0x83   :  { %vm40_vm2 = vcmp.eq.s32.totalorder %v25_v36, %v39_v40  ;;  %vm41_vm3 = vcmp.eq.s32.totalorder %v26_v37, %v39_v40  ;;  %508 = vmatpush3.msra.mxu0 %v228_v47 }
  0x84   :  { %419 = vmatprep.mubr.msk.f32.mxu1 %vm41_vm3, %v563_v39  ;;  %509 = vmatprep.subr.mxu0 %v564_v41 }
  0x85   :  { %420 = vmatmul.mubr.msk.f32.vlgmr.msra.gmra.mxu1 %vm40_vm2, %v563_v39  ;;  %510 = vmatpush3.msra.mxu0 %v227_v48 }
  0x86   :  { %517 = vmatpush3.msra.mxu1 %v225_v42  ;;  %524 = vmatprep.mubr.msk.f32.mxu1 %vm565_vm4, %v564_v41 }
  0x87   :  { %518 = vmatprep.subr.mxu1 %v564_v41  ;;  %511 = vmatprep.subr.mxu0 %v564_v41 }
  0x88   :  { %519 = vmatpush3.msra.mxu1 %v224_v43  ;;  %512 = vmatpush3.msra.mxu0 %v226_v49 }
  0x89   :  { %520 = vmatprep.subr.mxu1 %v564_v41 }
  0x8a   :  { %521 = vmatpush3.msra.mxu1 %v223_v44 }
  0x8b   :  { %522 = vmatprep.subr.mxu1 %v564_v41 }
  0x8c   :  { %523 = vmatpush3.msra.mxu1 %v222_v46 }
 0x140   :  { %v457_v50 = vpop.f32.mrf.mxu0 }
 0x142   :  { %v458_v51 = vpop.f32.mrf.mxu0 }
 0x143   :  { %v459_v52 = vadd.f32 %v458_v51, %v457_v50 }
 0x145   :  { %v218_v53 = vmul.f32 0.01, %v459_v52  ;;  %v492_v54 = vpop.f32.mrf.mxu1 }
 0x147   :  { %v219_v55 = vmax.f32 %v459_v52, %v218_v53  ;;  %v493_v56 = vpop.f32.mrf.mxu1 }
 0x148   :  { %v494_v57 = vadd.f32 %v493_v56, %v492_v54 }
 0x149   :  { %525 = vmatmul.mubr.msk.f32.vlgmr.msra.gmra.mxu1 %vm230_vm5, %v219_v55 }
 0x14a   :  { %v220_v58 = vmul.f32 0.01, %v494_v57 }
 0x14c   :  { %v221_v59 = vmax.f32 %v494_v57, %v220_v58 }
 0x14e   :  { %514 = vmatmul.mubr.msk.f32.vlgmr.msra.gmra.mxu0 %vm230_vm5, %v221_v59 }
 0x209   :  { %v373_v60 = vpop.f32.mrf.mxu1 }
 0x20b   :  { %v526_v61 = vpop.f32.mrf.mxu1 }
 0x20e   :  { %v300_v62 = vpop.f32.mrf.mxu0 }
 0x20f   :  { %v374_v0 = vadd.f32 %v373_v60, %v300_v62 }
 0x210   :  { %v515_v1 = vpop.f32.mrf.mxu0 }
 0x211   :  { %v384_v2 = vadd.f32 %v423_v63, %v374_v0 }
 0x213   :  { %v385_v3 = vsub.f32 0.0, %v384_v2 }
 0x215   :  { %v386_v4 = vmul.f32 1.442695, %v385_v3 }
 0x217   :  { %535 = vpow2.f32 %v386_v4 }
 0x224   :  { %v536_v5 = vpop.eup %535 }
 0x225   :  { %v388_v6 = vadd.f32 1.0, %v536_v5 }
 0x227   :  { %537 = vrcp.f32 %v388_v6 }
 0x234   :  { %v538_v8 = vpop.eup %537 }
 0x235   :  { %v397_v9 = vmul.f32 %v538_v8, %v424_v7 }
 0x237   :  { %398 = vst [vmem:[#allocation2] sm:$0xff] %v397_v9 }
 0x238   :  { %550 = shalt.err (!%p547_p4)
}
 0x239   :  { %408 = dma.vmem_to_hbm [thread:$0]  %s406_s30, 128, %s740_s6, [#allocation3]  }
 0x23a   :  { %559 = dma.done.wait [#allocation3], 128  }
 0x23b   :  { %560 = vsyncadd [#allocation3], 4294967168 }
 0x23c   :  { %412 = vsyncpa [#allocation3], 1 }

</bundles_post_ra>
